<compile_context>
chip_gen: v6e
topology: v6e:2x2x1
jax: 0.10.0
libtpu: 0.0.40
codegen_flags: <defaults>
</compile_context>

<pallas_src>
import functools

import jax
import jax.numpy as jnp
from jax.experimental import pallas as pl
from jax.experimental.pallas import tpu as pltpu


def _round_up(x, m):
    return ((x + m - 1) // m) * m


def _pick_batch_tiling(B, tb_cap):
    """Pad B and pick a batch tile: small padding, >=2 programs when possible."""
    B8 = _round_up(B, 8)
    if B8 <= tb_cap:
        # One or two tiles; prefer two so both v7x TensorCores get work.
        tb = _round_up(B8 // 2, 8) if B8 >= 16 else B8
        return _round_up(B8, tb), tb
    if B8 < 128:
        return _round_up(B8, tb_cap), tb_cap
    # Many tiles: largest power-of-two tile <= tb_cap that divides
    # round_up(B, 128), so padding waste is bounded by <128 rows.
    B128 = _round_up(B, 128)
    tb = 8
    while tb * 2 <= tb_cap and B128 % (tb * 2) == 0:
        tb *= 2
    return B128, tb


def _rbf_kan_kernel(x_ref, c_ref, w_ref, o_ref, *, inv_h, G):
    # x_ref: (TB, In)    f32 batch tile
    # c_ref: (1,  G*In)  f32 grid centers, lane j holds grid[j // In]
    # w_ref: (G*In, TN)  bf16 spline weight tile (g-major flatten, O padded)
    # o_ref: (TB, TN)    f32 output tile
    x = x_ref[...]
    xt = jnp.tile(x, (1, G))                      # (TB, G*In): lane-dense basis layout
    d = (xt - c_ref[...]) * inv_h                 # direct (x - c)/h form (no cancellation)
    basis = jnp.exp(-(d * d))                     # one dense EUP pass for all G points
    o_ref[...] = jnp.dot(
        basis.astype(jnp.bfloat16),
        w_ref[...],
        preferred_element_type=jnp.float32,
    ).astype(o_ref.dtype)


def rbf_kan_forward(x, grid_pts, spline_weight, *, grid_min, grid_max, tb_max=512):
    """Pallas implementation of RBFKANLayer.forward (rbf_linear path)."""
    B, In = x.shape
    In2, G, O = spline_weight.shape
    assert In2 == In
    assert grid_pts.shape[0] == G
    K = G * In
    inv_h = float((G - 1) / (grid_max - grid_min))

    # Lane-dense output: pad O up to a multiple of 128 (zero-padded W cols).
    O_pad = _round_up(O, 128)
    # N tile: fully-resident weight when small, else stream 256/128-wide tiles.
    if K * O_pad * 2 <= (8 << 20):
        tn = O_pad
    elif O_pad % 256 == 0:
        tn = 256
    else:
        tn = 128

    # Per-generation VMEM budget (~48 MiB on v7x, ~96 MiB on v5e/v6e).
    try:
        vmem_cap = int(pltpu.get_tpu_info().vmem_capacity_bytes)
    except Exception:
        vmem_cap = 64 << 20
    budget = max(16 << 20, (vmem_cap * 3) // 4)

    def footprint(tb):
        return (2 * tb * In * 4            # x tiles (double-buffered)
                + 2 * K * 4                # centers
                + 2 * K * tn * 2           # weight tiles (double-buffered)
                + 2 * tb * tn * 4          # output tiles
                + 3 * tb * K * 4           # xt / f32 basis / bf16 basis temporaries
                + (2 << 20))               # headroom

    tb_cap = tb_max
    while tb_cap > 8 and footprint(tb_cap) > budget:
        tb_cap //= 2
    B_pad, tb_eff = _pick_batch_tiling(B, tb_cap)
    vmem_limit = int(min(max(footprint(tb_eff), 16 << 20), budget))

    # --- parameter-setup glue (plain JAX, constant w.r.t. x) ---
    # g-major flatten: row g*In + i of W matches lane g*In + i of the basis.
    w = jnp.transpose(spline_weight.astype(jnp.float32), (1, 0, 2))   # (G, In, O)
    w = w.reshape(K, O).astype(jnp.bfloat16)
    if O_pad != O:
        w = jnp.pad(w, ((0, 0), (0, O_pad - O)))
    centers = jnp.repeat(jnp.asarray(grid_pts, jnp.float32), In).reshape(1, K)
    x_p = x.astype(jnp.float32)
    if B_pad != B:
        x_p = jnp.pad(x_p, ((0, B_pad - B), (0, 0)))

    kernel = functools.partial(_rbf_kan_kernel, inv_h=inv_h, G=G)
    out = pl.pallas_call(
        kernel,
        out_shape=jax.ShapeDtypeStruct((B_pad, O_pad), jnp.float32),
        grid=(B_pad // tb_eff, O_pad // tn),
        in_specs=[
            pl.BlockSpec((tb_eff, In), lambda i, j: (i, 0)),   # x: batch-tiled
            pl.BlockSpec((1, K), lambda i, j: (0, 0)),         # centers: resident
            pl.BlockSpec((K, tn), lambda i, j: (0, j)),        # W: N-tiled
        ],
        out_specs=pl.BlockSpec((tb_eff, tn), lambda i, j: (i, j)),
        compiler_params=pltpu.CompilerParams(
            dimension_semantics=("parallel", "parallel"),
            vmem_limit_bytes=vmem_limit,
        ),
    )(x_p, centers, w)

    # Slice only when padding was actually added (avoids an extra HBM pass).
    if B_pad != B or O_pad != O:
        out = out[:B, :O]
    return out


if __name__ == "__main__":
    # Small, deterministic problem consistent with RBFKANLayer(input_dim, output_dim).
    B, In, O, G = 16, 16, 32, 8
    grid_min, grid_max = -2.0, 2.0

    key = jax.random.PRNGKey(0)
    kx, kw = jax.random.split(key)
    x = jax.random.normal(kx, (B, In), dtype=jnp.float32)
    # spline_weight ~ randn(in, num_grids, out) * spline_weight_init_scale (0.1)
    spline_weight = jax.random.normal(kw, (In, G, O), dtype=jnp.float32) * 0.1
    # grid = linspace(grid_min, grid_max, num_grids), non-trainable parameter
    grid_pts = jnp.linspace(grid_min, grid_max, G, dtype=jnp.float32)
    # TODO(synk): base_linear (nn.Linear) + base_activation are created in
    # __init__ but never used by RBFKANLayer.forward(), so they are
    # deliberately not implemented here.

    out = rbf_kan_forward(
        x, grid_pts, spline_weight, grid_min=grid_min, grid_max=grid_max
    )
    out = jax.block_until_ready(out)

    # Pure-JAX f32 reference matching the PyTorch forward exactly.
    h = (grid_max - grid_min) / (G - 1)
    basis_ref = jnp.exp(-(((x[..., None] - grid_pts) / h) ** 2))     # (B, In, G)
    ref = jnp.einsum("bid,ido->bo", basis_ref, spline_weight)        # (B, O)

    assert out.shape == (B, O), out.shape
    max_err = float(jnp.max(jnp.abs(out - ref)))
    # bf16 MXU inputs with f32 accumulation: tolerance loosened from 1e-4.
    assert jnp.allclose(out, ref, atol=2e-2, rtol=2e-2), f"max_err={max_err}"
    print("KERNEL_OK")
</pallas_src>

<mosaic_0001>
module attributes {stable_mosaic.version = 11 : i64} {
  func.func @_rbf_kan_kernel(%arg0: i32, %arg1: i32, %arg2: memref<8x16xf32, #tpu.memory_space<vmem>>, %arg3: memref<1x128xf32, #tpu.memory_space<vmem>>, %arg4: memref<128x128xbf16, #tpu.memory_space<vmem>>, %arg5: memref<8x128xf32, #tpu.memory_space<vmem>>) attributes {dimension_semantics = [#tpu.dimension_semantics<parallel>, #tpu.dimension_semantics<parallel>], iteration_bounds = array<i64: 2, 1>, scalar_prefetch = 0 : i64, scratch_operands = 0 : i64, tpu.core_type = #tpu.core_type<tc>, window_params = [{transform_indices = @transform_0, window_bounds = array<i64: 8, 16>}, {pipeline_mode = #tpu.pipeline_mode<synchronous>, transform_indices = @transform_1, window_bounds = array<i64: 1, 128>}, {transform_indices = @transform_2, window_bounds = array<i64: 128, 128>}, {transform_indices = @transform_3, window_bounds = array<i64: 8, 128>}]} {
    %c0 = arith.constant 0 : index
    %c0_0 = arith.constant 0 : index
    %0 = vector.load %arg2[%c0, %c0_0] : memref<8x16xf32, #tpu.memory_space<vmem>>, vector<8x16xf32>
    %1 = tpu.concatenate %0, %0, %0, %0, %0, %0, %0, %0 in 1 : vector<8x16xf32>, vector<8x16xf32>, vector<8x16xf32>, vector<8x16xf32>, vector<8x16xf32>, vector<8x16xf32>, vector<8x16xf32>, vector<8x16xf32> -> vector<8x128xf32>
    %c0_1 = arith.constant 0 : index
    %c0_2 = arith.constant 0 : index
    %2 = vector.load %arg3[%c0_1, %c0_2] : memref<1x128xf32, #tpu.memory_space<vmem>>, vector<1x128xf32>
    %3 = vector.broadcast %2 : vector<1x128xf32> to vector<8x128xf32>
    %4 = arith.subf %1, %3 : vector<8x128xf32>
    %cst = arith.constant 1.750000e+00 : f32
    %5 = vector.broadcast %cst : f32 to vector<8x128xf32>
    %6 = arith.mulf %4, %5 : vector<8x128xf32>
    %7 = arith.mulf %6, %6 : vector<8x128xf32>
    %cst_3 = arith.constant 0.000000e+00 : f32
    %8 = vector.broadcast %cst_3 : f32 to vector<8x128xf32>
    %9 = arith.subf %8, %7 : vector<8x128xf32>
    %10 = math.exp %9 : vector<8x128xf32>
    %11 = arith.truncf %10 : vector<8x128xf32> to vector<8x128xbf16>
    %c0_4 = arith.constant 0 : index
    %c0_5 = arith.constant 0 : index
    %12 = vector.load %arg4[%c0_4, %c0_5] : memref<128x128xbf16, #tpu.memory_space<vmem>>, vector<128x128xbf16>
    %cst_6 = arith.constant dense<0.000000e+00> : vector<8x128xf32>
    %13 = tpu.matmul %11, %12, %cst_6 {dimension_numbers = #tpu.dot_dimension_numbers<[1], [0], [0], [1], [0, 0, 1, 1], [], []>} : vector<8x128xbf16>, vector<128x128xbf16>, vector<8x128xf32> -> vector<8x128xf32>
    %c0_7 = arith.constant 0 : index
    %c0_8 = arith.constant 0 : index
    %14 = vector.load %arg5[%c0_7, %c0_8] : memref<8x128xf32, #tpu.memory_space<vmem>>, vector<8x128xf32>
    tpu.vector_store %arg5[%c0_7, %c0_8], %13 {strides = array<i32>} : memref<8x128xf32, #tpu.memory_space<vmem>>, vector<8x128xf32>,
    return
  }
  func.func @transform_0(%arg0: i32, %arg1: i32) -> (i32, i32) {
    %c0_i32 = arith.constant 0 : i32
    %c0_i32_0 = arith.constant 0 : i32
    return %arg0, %c0_i32 : i32, i32
  }
  func.func @transform_1(%arg0: i32, %arg1: i32) -> (i32, i32) {
    %c0_i32 = arith.constant 0 : i32
    %c0_i32_0 = arith.constant 0 : i32
    %c0_i32_1 = arith.constant 0 : i32
    return %c0_i32, %c0_i32_0 : i32, i32
  }
  func.func @transform_2(%arg0: i32, %arg1: i32) -> (i32, i32) {
    %c0_i32 = arith.constant 0 : i32
    %c0_i32_0 = arith.constant 0 : i32
    return %c0_i32, %arg1 : i32, i32
  }
  func.func @transform_3(%arg0: i32, %arg1: i32) -> (i32, i32) {
    %c0_i32 = arith.constant 0 : i32
    return %arg0, %arg1 : i32, i32
  }
}

</mosaic_0001>

<bundles_post_ra>
// kernel: tpu_custom_call.1
= control target key start
LH: loop header
LB: loop body
LE: loop exit
PB: predicated region body
PF: predicated region fallthrough
CT: control target
= control target key end

     0   :  { %8 = vsyncpa [#allocation3], 0  ;;  %s992_s0 = inlined_call_operand.hbm [shape: f32[16,16], index: 0, kind: input, shape index: {}]   ;;  %s993_s1 = inlined_call_operand.vmem [shape: f32[1,128], index: 1, kind: input, shape index: {}]   ;;  %s994_s2 = inlined_call_operand.hbm [shape: bf16[128,128], index: 2, kind: input, shape index: {}]   ;;  %s995_s3 = inlined_call_operand.hbm [shape: f32[16,128], index: 3, kind: output, shape index: {}]  }
   0x1   :  { %10 = vsyncpa [#allocation3 + $0x1], 0 }
   0x2   :  { %11 = vsyncpa [#allocation6], 0 }
   0x3   :  { %12 = vsyncpa [#allocation4], 0 }
   0x4   :  { %14 = vsyncpa [#allocation4 + $0x1], 0  ;;  %s806_s12 = smov 0   ;;  %s808_s13 = smov 0  }
   0x5   :  { %s810_s14 = smov 0   ;;  %s812_s15 = smov 0  }
   0x6   :  { %s814_s16 = smov 0   ;;  %s816_s17 = smov 0  }
   0x7 LB: > { %s485_s18 = sadd.s32 4294967295, %s770_s17   ;;  %s486_s19 = sadd.s32 4294967294, %s770_s17   ;;  %s770_s17 = sphi %s816_s17, %s20_s17   ;;  %s766_s16 = sphi %s814_s16, %s1013_s16   ;;  %s762_s15 = sphi %s812_s15, %s1012_s15   ;;  %s758_s14 = sphi %s810_s14, %s1011_s14   ;;  %s754_s13 = sphi %s808_s13, %s1010_s13   ;;  %s750_s12 = sphi %s806_s12, %s1009_s12  }
   0x8   : > { %p52_p0 = scmp.ne.s32.totalorder %s754_s13, %s750_s12  ;;  %p840_p1 = scmp.eq.s32.totalorder %s485_s18, 0 }
   0x9   : > { %p844_p2 = scmp.eq.s32.totalorder %s485_s18, 1  ;;  %p131_p3 = scmp.eq.s32.totalorder %s486_s19, 1 }
   0xa   : > { %p850_p4 = por %p840_p1, %p52_p0  ;;  %p487_p5 = scmp.ge.s32.totalorder %s770_s17, 1 }
   0xb   : > { %p855_p6 = por %p131_p3, %p52_p0  ;;  %p138_p7 = scmp.lt.s32.totalorder %s770_s17, 3 }
   0xc   : > { %s999_s22 = scalar_select %p850_p4, 1, 0 }
   0xd   : > { %s1000_s23 = scalar_select %p855_p6, 1, 0 }
   0xe   : > { %p860_p8 = pnand %p487_p5, %p138_p7  ;;  %s772_s25 = smov [#allocation5]  }
   0xf   : > { %s155_s26 = sshll.u32 %s772_s25, 4  ;;  %s32_s28 = sadd.s32 1, %s766_s16  ;;  %s156_s26 = int_to_ptr.vmem [resolvable:$true] %s155_s26 }
  0x10   : > { %p546_p9 = pneg %p860_p8  ;;  %s643_s29 = scalar_lea.vmem %s156_s26, 1024 }
  0x11   : > { %p644_p13 = scmp.ne.s32.totalorder %s156_s26, %s643_s29  ;;  %p651_p5 = scmp.lt.s32.totalorder %s156_s26, %s156_s26 }
  0x12   : > { %p869_p11 = pnand %p546_p9, %p840_p1  ;;  %p652_p7 = scmp.lt.s32.totalorder %s643_s29, %s643_s29 }
  0x14   : > { %p634_p12 = pneg %p869_p11  ;;  %p653_p6 = por %p652_p7, %p651_p5 }
  0x16   : > { %p646_p0 = pnand %p644_p13, %p634_p12 }
  0x18   : > { %p647_p3 = pneg %p646_p0 }
  0x1a   : > { %p654_p4 = pnand %p653_p6, %p647_p3 }
  0x1c   : > { %657 = shalt.err (!%p654_p4)
}
  0x1d   : > { %s773_s30 = smov 64   ;;  %s774_s4 = smov 4  }
  0x1e   : > { %549 = dma.hbm_to_vmem [thread:$0]  (!%p869_p11), %s994_s2, 1024, %s156_s26, [#allocation6], %s773_s30, %s773_s30, %s774_s4  }
  0x1f   : > { %p34_p6 = scmp.ge.s32.totalorder %s32_s28, 2  ;;  %s39_s7 = sadd.s32 1, %s758_s14 }
  0x20   : > { %p46_p4 = scmp.ne.s32.totalorder %s758_s14, %s754_s13  ;;  %p47_p9 = scmp.eq.s32.totalorder %s770_s17, 0 }
  0x21   : > { %s1015_s28 = smov (%p34_p6, %s32_s28), 0  ;;  %p559_p0 = scmp.lt.s32.totalorder %s770_s17, 2 }
  0x22   : > { %p887_p12 = por %p47_p9, %p46_p4  ;;  %p893_p13 = por %p844_p2, %p46_p4 }
  0x23   : > { %s36_s10 = ssub.s32 %s766_s16, %s1015_s28  ;;  %s169_s11 = sand.u32 1, %s758_s14  }
  0x24   : > { %p37_p11 = scmp.eq.s32.totalorder %s36_s10, 0  ;;  %s490_s18 = sshll.u32 %s169_s11, 3 }
  0x25   : > { %s491_s25 = sshll.u32 %s766_s16, 7  ;;  %s173_s30 = scalar_lea.vmem [#allocation2], %s490_s18 }
  0x26   : > { %s902_s19 = scalar_select %p37_p11, %s758_s14, %s39_s7  }
  0x27   : > { %s178_s29 = scalar_lea.hbm %s992_s0, %s491_s25  ;;  %s180_s4 = sshll.u32 %s173_s30, 4  ;;  %s181_s4 = int_to_ptr.vmem [resolvable:$true] %s180_s4 }
  0x28   : > { %p910_p2 = pnand %p559_p0, %p887_p12  ;;  %s170_s5 = scalar_lea.sflag [#allocation3], %s169_s11 }
  0x29   : > { %s671_s6 = scalar_lea.vmem %s181_s4, 128  ;;  %s775_s7 = smov [#allocation2]  }
  0x2a   : > { %p660_p3 = pneg %p910_p2  ;;  %p672_p5 = scmp.ne.s32.totalorder %s181_s4, %s671_s6 }
  0x2b   : > { %s676_s10 = sshll.u32 %s775_s7, 4  ;;  %s677_s10 = int_to_ptr.vmem [resolvable:$false] %s676_s10 }
  0x2c   : > { %p674_p7 = pnand %p672_p5, %p660_p3  ;;  %s678_s25 = scalar_lea.vmem %s677_s10, 256 }
  0x2d   : > { %p679_p4 = scmp.lt.s32.totalorder %s181_s4, %s677_s10  ;;  %p680_p9 = scmp.lt.s32.totalorder %s678_s25, %s671_s6 }
  0x2e   : > { %p675_p6 = pneg %p674_p7 }
  0x2f   : > { %p681_p11 = por %p680_p9, %p679_p4 }
  0x31   : > { %p682_p10 = pnand %p681_p11, %p675_p6 }
  0x33   : > { %685 = shalt.err (!%p682_p10)
}
  0x34   : > { %553 = dma.hbm_to_vmem [thread:$0]  (!%p910_p2), %s178_s29, 128, %s181_s4, %s170_s5  }
  0x35   : > { %189 = sbr.rel (%p860_p8) target bundleno = 425 (0x1a9), region = 32  ;;  %s921_s8 = sand.u32 (!%p860_p8), 1, %s754_s13  }
  0x36   : > { %s493_s11 = sshll.u32 (!%p860_p8), %s921_s8, 3  ;;  %s192_s18 = scalar_lea.sflag (!%p860_p8), [#allocation3], %s921_s8 }
  0x37   : > { %s195_s26 = scalar_lea.vmem (!%p860_p8), [#allocation2], %s493_s11  ;;  %p1006_p12 = scmp.ne.s32.totalorder (!%p860_p8), %s999_s22, 0 }
  0x3a   : > { %737 = dma.done.wait (%p1006_p12), %s192_s18, 128  }
  0x3b   : > { %739 = vsyncadd (%p1006_p12), %s192_s18, 4294967168 }
  0x3c   : > { %741 = dma.done.wait (%p840_p1), [#allocation6], 1024  }
  0x3d   : > { %743 = vsyncadd (%p840_p1), [#allocation6], 4294966272  ;;  %v776_v0 = vmov 0.0   ;;  %v223_v1 = vld [vmem:[%s195_s26] sm:$0xff]  ;;  %s777_s24 = smov 16   ;;  %s778_s27 = smov 48  }
  0x3e   : > { %518 = vmatprep.subr.bf16.mxu0 %v776_v0  ;;  %225 = vrot.lane.b32.xlu0 %v223_v1, %s777_s24  ;;  %v622_v2 = vld [vmem:[#allocation5 + $0x38] sm:$0xff]   ;;  %v623_v3 = vld [vmem:[#allocation5 + $0x30] sm:$0xff]   ;;  %s779_s29 = smov 32   ;;  %s780_s22 = smov 64   ;;  %v624_v4 = vld [vmem:[#allocation5 + $0x28] sm:$0xff]   ;;  %vm783_vm0 = vmmov 0  }
  0x3f   : > { %231 = vrot.lane.b32.xlu1 %v223_v1, %s778_s27  ;;  %519 = vmatpush3.bf16.msra.mxu0 %v622_v2  ;;  %s781_s20 = smov 80   ;;  %s782_s30 = smov 96   ;;  %v625_v5 = vld [vmem:[#allocation5 + $0x20] sm:$0xff]   ;;  %v626_v6 = vld [vmem:[#allocation5 + $0x18] sm:$0xff]   ;;  %v627_v7 = vld [vmem:[#allocation5 + $0x10] sm:$0xff]   ;;  %vm246_vm1 = vcmask 130048  }
  0x40   : > { %520 = vmatprep.subr.bf16.mxu0 %v776_v0  ;;  %534 = vmatprep.mubr.msk.bf16.mxu0 %vm783_vm0, %v776_v0  ;;  %s784_s4 = smov 112   ;;  %v628_v8 = vld [vmem:[#allocation5 + $0x8] sm:$0xff]   ;;  %v629_v9 = vld [vmem:[#allocation5] sm:$0xff]   ;;  %vm248_vm2 = vcmask 261120   ;;  %vm250_vm3 = vcmask 392192   ;;  %vm252_vm4 = vcmask 523264  }
  0x41   : > { %vm254_vm5 = vcmask 654336   ;;  %vm256_vm6 = vcmask 785408   ;;  %vm258_vm7 = vcmask 916480   ;;  %v496_v21 = vld [vmem:[%s993_s1] ss:$0 sm:$0xff]  ;;  %s221_s6 = scalar_lea.vmem [#allocation7], %s493_s11 }
  0x42   : > { %228 = vrot.lane.b32.xlu0 %v223_v1, %s779_s29  ;;  %s394_s7 = sshll.u32 %s221_s6, 4  ;;  %s506_s10 = sshll.u32 %s762_s15, 7  ;;  %s941_s7 = int_to_ptr.vmem [resolvable:$true] %s394_s7 }
  0x43   : > { %234 = vrot.lane.b32.xlu1 %v223_v1, %s780_s22  ;;  %521 = vmatpush3.bf16.msra.mxu0 %v623_v3  ;;  %s946_s26 = scalar_lea.hbm %s995_s3, %s506_s10  ;;  %s380_s24 = scalar_lea.sflag [#allocation4], %s921_s8 }
  0x44   : > { %522 = vmatprep.subr.bf16.mxu0 %v776_v0  ;;  %s686_s27 = scalar_lea.vmem %s941_s7, 128  ;;  %s785_s15 = smov [#allocation7]  }
  0x45   : > { %p687_p1 = scmp.ne.s32.totalorder %s941_s7, %s686_s27  ;;  %s690_s11 = sshll.u32 %s785_s15, 4  ;;  %s691_s11 = int_to_ptr.vmem [resolvable:$false] %s690_s11 }
  0x46   : > { %237 = vrot.lane.b32.xlu0 %v223_v1, %s781_s20  ;;  %s692_s29 = scalar_lea.vmem %s691_s11, 256  ;;  %p693_p0 = scmp.lt.s32.totalorder %s941_s7, %s691_s11 }
  0x47   : > { %240 = vrot.lane.b32.xlu1 %v223_v1, %s782_s30  ;;  %523 = vmatpush3.bf16.msra.mxu0 %v624_v4  ;;  %p688_p8 = pnand %p687_p1, %p893_p13  ;;  %p694_p2 = scmp.lt.s32.totalorder %s692_s29, %s686_s27 }
  0x48   : > { %524 = vmatprep.subr.bf16.mxu0 %v776_v0 }
  0x49   : > { %p689_p10 = pneg %p688_p8  ;;  %p695_p3 = por %p694_p2, %p693_p0 }
  0x4a   : > { %243 = vrot.lane.b32.xlu0 %v223_v1, %s784_s4 }
  0x4b   : > { %525 = vmatpush3.bf16.msra.mxu0 %v625_v5  ;;  %p696_p5 = pnand %p695_p3, %p689_p10 }
  0x4c   : > { %526 = vmatprep.subr.bf16.mxu0 %v776_v0 }
  0x4f   : > { %527 = vmatpush3.bf16.msra.mxu0 %v626_v6 }
  0x50   : > { %528 = vmatprep.subr.bf16.mxu0 %v776_v0 }
  0x53   : > { %529 = vmatpush3.bf16.msra.mxu0 %v627_v7 }
  0x54   : > { %530 = vmatprep.subr.bf16.mxu0 %v776_v0 }
  0x57   : > { %531 = vmatpush3.bf16.msra.mxu0 %v628_v8 }
  0x58   : > { %532 = vmatprep.subr.bf16.mxu0 %v776_v0 }
  0x5b   : > { %533 = vmatpush3.bf16.msra.mxu0 %v629_v9 }
  0xb0   : > { %v226_v10 = vpop.permute.xlu0 %225 }
  0xb1   : > { %v232_v11 = vpop.permute.xlu1 %231  ;;  %v247_v12 = vsel %vm246_vm1, %v223_v1, %v226_v10 }
  0xb4   : > { %v229_v13 = vpop.permute.xlu0 %228 }
  0xb5   : > { %v235_v14 = vpop.permute.xlu1 %234  ;;  %v249_v15 = vsel %vm248_vm2, %v247_v12, %v229_v13 }
  0xb6   : > { %v251_v16 = vsel %vm250_vm3, %v249_v15, %v232_v11 }
  0xb7   : > { %v253_v17 = vsel %vm252_vm4, %v251_v16, %v235_v14 }
  0xb8   : > { %v238_v18 = vpop.permute.xlu0 %237 }
  0xb9   : > { %v255_v19 = vsel %vm254_vm5, %v253_v17, %v238_v18  ;;  %v241_v20 = vpop.permute.xlu1 %240 }
  0xba   : > { %v257_v22 = vsel %vm256_vm6, %v255_v19, %v241_v20 }
  0xbc   : > { %v244_v23 = vpop.permute.xlu0 %243 }
  0xbd   : > { %v259_v24 = vsel %vm258_vm7, %v257_v22, %v244_v23 }
  0xbe   : > { %v267_v25 = vsub.f32 %v259_v24, %v496_v21 }
  0xc0   : > { %v268_v26 = vmul.f32 1.75, %v267_v25 }
  0xc2   : > { %v269_v27 = vmul.f32 %v268_v26, %v268_v26 }
  0xc4   : > { %v270_v28 = vsub.f32 0.0, %v269_v27 }
  0xc6   : > { %v271_v29 = vmul.f32 1.442695, %v270_v28 }
  0xc8   : > { %630 = vpow2.f32 %v271_v29 }
  0xd5   : > { %v631_v30 = vpop.eup %630 }
  0xd6   : > { %v273_v31 = vpack.c.bf16 %v631_v30, %v631_v30 }
  0xd8   : > { %535 = vmatmul.mubr.bf16.vlgmr.msra.gmra.mxu0 %v273_v31 }
 0x198   : > { %v372_v32 = vpop.f32.mrf.mxu0 }
 0x199   : > { %378 = vst [vmem:[%s221_s6] sm:$0xff] %v372_v32 }
 0x19a   : > { %v536_v33 = vpop.f32.mrf.mxu0 }
 0x19b   : > { %699 = shalt.err (!%p696_p5)
}
 0x19c   : > { %s700_s22 = scalar_lea.hbm %s946_s26, 128  ;;  %s704_s30 = scalar_lea.hbm %s995_s3, 256 }
 0x19d   : > { %p701_p7 = scmp.ne.s32.totalorder %s946_s26, %s700_s22  ;;  %p705_p9 = scmp.lt.s32.totalorder %s946_s26, %s995_s3 }
 0x19e   : > { %p706_p11 = scmp.lt.s32.totalorder %s704_s30, %s700_s22 }
 0x19f   : > { %p702_p6 = pnand %p701_p7, %p893_p13 }
 0x1a0   : > { %p707_p12 = por %p706_p11, %p705_p9 }
 0x1a1   : > { %p703_p4 = pneg %p702_p6 }
 0x1a3   : > { %p708_p1 = pnand %p707_p12, %p703_p4 }
 0x1a5   : > { %711 = shalt.err (!%p708_p1)
}
 0x1a6   : > { %544 = dma.vmem_to_hbm [thread:$0]  (%p893_p13), %s941_s7, 128, %s946_s26, %s380_s24   ;;  %v375_v34 = vpop.f32.mrf.mxu0 }
 0x1a8   : > { %v537_v35 = vpop.f32.mrf.mxu0 }
 0x1a9 PF: > { %s406_s5 = sand.u32 1, %s750_s12   ;;  %p1007_p8 = scmp.ne.s32.totalorder %s1000_s23, 0 }
 0x1aa   : > { %p1008_p10 = scmp.ge.s32.totalorder %s770_s17, 2  ;;  %s407_s6 = scalar_lea.sflag [#allocation4], %s406_s5 }
 0x1ac   : > { %p555_p0 = pnand %p1008_p10, %p1007_p8 }
 0x1ae   : > { %p556_p2 = pneg %p555_p0 }
 0x1b0   : > { %745 = dma.done.wait (%p556_p2), %s407_s6, 128  }
 0x1b1   : > { %747 = vsyncadd (%p556_p2), %s407_s6, 4294967168  ;;  %s20_s17 = sadd.s32 1, %s770_s17   ;;  %s1009_s12 = smov %s754_s13 }
 0x1b2   : > { %p17_p3 = scmp.ge.s32.totalorder %s20_s17, 4   ;;  %s1010_s13 = smov %s758_s14 }
 0x1b3   : > { %s1011_s14 = smov %s902_s19  ;;  %s1012_s15 = smov %s766_s16 }
 0x1b4   : > { %s1013_s16 = smov %s1015_s28  ;;  %19 = sbr.rel (!%p17_p3) target bundleno = 7 (0x7), region = 82 }
 0x1b9   :  { %412 = vsyncpa [#allocation3], 1 }
 0x1ba   :  { %414 = vsyncpa [#allocation3 + $0x1], 1 }
 0x1bb   :  { %415 = vsyncpa [#allocation6], 1 }
 0x1bc   :  { %416 = vsyncpa [#allocation4], 1 }
 0x1bd   :  { %418 = vsyncpa [#allocation4 + $0x1], 1 }

</bundles_post_ra>
